<compile_context>
chip_gen: v7x
topology: tpu7x:2x2x1
jax: 0.10.0
libtpu: 0.0.40
codegen_flags: <defaults>
</compile_context>

<pallas_src>
import functools

import jax
import jax.numpy as jnp
from jax.experimental import pallas as pl
from jax.experimental.pallas import tpu as pltpu


def _round_up(x: int, m: int) -> int:
    return ((x + m - 1) // m) * m


def _cdiv(a: int, b: int) -> int:
    return (a + b - 1) // b


# ----------------------------- Pallas kernel ------------------------------ #
def _f0_predictor_kernel(
    f0_ref,      # (1, 1, TILE_T)  f0 frames on lanes
    vol_ref,     # (1, 1, TILE_T)  volume frames on lanes
    ctx_ref,     # (1, H, 1)       per-batch folded context column: w1.T@(b_in+ctx)+b1
    params_ref,  # (H, 4)          col0/1 = A = (w_in@w1).T, col2 = w2, col3 = b2
    out_ref,     # (1, 1, TILE_T)  predicted f0, frames on lanes
):
    f0 = f0_ref[0]                    # (1, TILE_T)
    vol = vol_ref[0]                  # (1, TILE_T)
    c = ctx_ref[0]                    # (H, 1)
    a_f0 = params_ref[:, 0:1]         # (H, 1)
    a_vol = params_ref[:, 1:2]        # (H, 1)
    w2 = params_ref[:, 2:3]           # (H, 1)
    b2 = params_ref[0:1, 3:4]         # (1, 1)

    # Fused input-projection + hidden layer: pure lane-parallel VPU work
    # (features on sublanes, frames on lanes).
    h_t = jnp.maximum(a_f0 * f0 + a_vol * vol + c, 0.0)           # (H, TILE_T)

    # Output projection as a sublane (XLU) reduction, lane-dense store.
    out_row = jnp.sum(h_t * w2, axis=0, keepdims=True) + b2       # (1, TILE_T)
    out_ref[...] = out_row[None].astype(out_ref.dtype)            # (1, 1, TILE_T)


@functools.partial(jax.jit, static_argnames=("tile_t",))
def _run_f0_kernel(f0_in, vol_in, ctx_col, params, *, tile_t):
    b, _, t = f0_in.shape
    h = params.shape[0]
    grid = (b, pl.cdiv(t, tile_t))
    frame_map = lambda bi, ti: (bi, 0, ti)
    const = lambda bi, ti: (0, 0)   # params: same block every step -> VMEM-resident
    return pl.pallas_call(
        _f0_predictor_kernel,
        out_shape=jax.ShapeDtypeStruct((b, 1, t), jnp.float32),
        grid=grid,
        in_specs=[
            pl.BlockSpec((1, 1, tile_t), frame_map),
            pl.BlockSpec((1, 1, tile_t), frame_map),
            pl.BlockSpec((1, h, 1), lambda bi, ti: (bi, 0, 0)),
            pl.BlockSpec((h, 4), const),
        ],
        out_specs=pl.BlockSpec((1, 1, tile_t), frame_map),
        compiler_params=pltpu.CompilerParams(
            dimension_semantics=("parallel", "parallel")),
    )(f0_in, vol_in, ctx_col, params)


def _choose_tile_t(b: int, t: int) -> int:
    """Large lane tiles (HBM-roofline friendly), but keep >= 2 grid steps
    so both v7x TensorCores get work."""
    tile = min(2048, _round_up(max(t, 1), 128))
    while tile > 128 and b * _cdiv(t, tile) < 2:
        tile = max(128, _round_up(tile // 2, 128))
    return tile


# ------------------------------ Generator --------------------------------- #
class Generator:
    """Pallas/JAX port of Generator: inference path producing f0_output."""

    def __init__(self, *, num_phonemes=40, num_speakers=4, hidden=32, seed=0):
        # TODO(synk): the real Predictor architecture (and torch checkpoint
        # loading) is external to the reference source; a representative
        # synthetic per-frame MLP predictor of matching I/O is used instead.
        self.hidden = hidden
        key = jax.random.PRNGKey(seed)
        ks = jax.random.split(key, 5)
        scale = 0.1
        self.phoneme_embed = scale * jax.random.normal(
            ks[0], (num_phonemes, hidden), jnp.float32)
        self.speaker_embed = scale * jax.random.normal(
            ks[1], (num_speakers, hidden), jnp.float32)
        self.w_in = scale * jax.random.normal(ks[2], (2, hidden), jnp.float32)
        self.b_in = jnp.zeros((hidden,), jnp.float32)
        self.w1 = scale * jax.random.normal(ks[3], (hidden, hidden), jnp.float32)
        self.b1 = jnp.zeros((hidden,), jnp.float32)
        self.w2 = scale * jax.random.normal(ks[4], (hidden, 1), jnp.float32)
        self.b2 = jnp.zeros((), jnp.float32)

        # Algebraic fold of the input projection into the hidden layer:
        #   h = relu((f0*w_in[0] + vol*w_in[1] + b_in + ctx) @ w1 + b1)
        #     = relu(f0*A[:,0] + vol*A[:,1] + c_b)   with A = (w_in @ w1).T
        a_t = jnp.einsum("ih,hj->ij", self.w_in, self.w1,
                         precision=jax.lax.Precision.HIGHEST).T        # (H, 2)
        b2_col = jnp.full((hidden, 1), self.b2, jnp.float32)
        # One resident (H, 4) parameter slab: [A_f0, A_vol, w2, b2].
        self._params = jnp.concatenate([a_t, self.w2, b2_col], axis=1)  # (H, 4)

    def _context(self, lab_phoneme_ids, lab_durations, speaker_id):
        # Tiny gathers + duration-weighted pooling: left to XLA on purpose.
        ph_emb = jnp.take(self.phoneme_embed, lab_phoneme_ids, axis=0)   # (B, P, H)
        dur_w = lab_durations / (
            jnp.sum(lab_durations, axis=1, keepdims=True) + 1e-6)        # (B, P)
        ph_ctx = jnp.sum(ph_emb * dur_w[:, :, None], axis=1)             # (B, H)
        spk_emb = jnp.take(self.speaker_embed, speaker_id, axis=0)       # (B, H)
        return ph_ctx + spk_emb                                          # (B, H)

    def forward(self, *, lab_phoneme_ids, lab_durations, f0_data, volume_data,
                speaker_id):
        """Returns dict(f0_output=(B, T) float32)."""
        lab_phoneme_ids = jnp.asarray(lab_phoneme_ids, jnp.int32)
        lab_durations = jnp.asarray(lab_durations, jnp.float32)
        f0_data = jnp.asarray(f0_data, jnp.float32)
        volume_data = jnp.asarray(volume_data, jnp.float32)
        speaker_id = jnp.asarray(speaker_id, jnp.int32)

        b, t = f0_data.shape

        # Per-batch folded context column: c_b = w1.T @ (b_in + ctx_b) + b1.
        ctx = self._context(lab_phoneme_ids, lab_durations, speaker_id)  # (B, H)
        c = jnp.einsum("bh,hj->bj", ctx + self.b_in, self.w1,
                       precision=jax.lax.Precision.HIGHEST) + self.b1    # (B, H)
        ctx_col = c[:, :, None]                                          # (B, H, 1)

        # Free metadata reshapes only (no pad/stack HBM pass): frames stay on
        # lanes; Pallas masks the ragged tail block via pl.cdiv grid sizing.
        f0_in = f0_data[:, None, :]                                      # (B, 1, T)
        vol_in = volume_data[:, None, :]                                 # (B, 1, T)

        tile_t = _choose_tile_t(b, t)
        out = _run_f0_kernel(f0_in, vol_in, ctx_col, self._params,
                             tile_t=tile_t)                              # (B, 1, T)
        return {"f0_output": out[:, 0, :]}


# ------------------------- pure-JAX reference ------------------------------ #
def _reference_forward(gen, lab_phoneme_ids, lab_durations, f0_data,
                       volume_data, speaker_id):
    ctx = gen._context(lab_phoneme_ids, lab_durations, speaker_id)       # (B, H)
    x = (f0_data[..., None] * gen.w_in[0]
         + volume_data[..., None] * gen.w_in[1]
         + gen.b_in
         + ctx[:, None, :])                                              # (B, T, H)
    hdn = jnp.maximum(
        jnp.einsum("bth,hk->btk", x, gen.w1,
                   precision=jax.lax.Precision.HIGHEST) + gen.b1, 0.0)
    out = jnp.einsum("bth,hk->btk", hdn, gen.w2,
                     precision=jax.lax.Precision.HIGHEST)[..., 0] + gen.b2
    return out


# --------------------------------- main ------------------------------------ #
if __name__ == "__main__":
    B, P, T, H = 2, 8, 16, 32
    key = jax.random.PRNGKey(0)
    k1, k2, k3, k4, k5 = jax.random.split(key, 5)

    lab_phoneme_ids = jax.random.randint(k1, (B, P), 0, 40, jnp.int32)
    lab_durations = jax.random.uniform(k2, (B, P), jnp.float32, 0.05, 0.3)
    f0_data = 100.0 + 50.0 * jax.random.uniform(k3, (B, T), jnp.float32)
    volume_data = jax.random.uniform(k4, (B, T), jnp.float32, -1.0, 1.0)
    speaker_id = jax.random.randint(k5, (B,), 0, 4, jnp.int32)

    gen = Generator(hidden=H, seed=0)
    out = gen.forward(
        lab_phoneme_ids=lab_phoneme_ids,
        lab_durations=lab_durations,
        f0_data=f0_data,
        volume_data=volume_data,
        speaker_id=speaker_id,
    )
    f0_output = jax.block_until_ready(out["f0_output"])
    assert f0_output.shape == (B, T)
    assert f0_output.dtype == jnp.float32

    ref = _reference_forward(gen, lab_phoneme_ids, lab_durations, f0_data,
                             volume_data, speaker_id)
    assert jnp.allclose(f0_output, ref, rtol=2e-2, atol=1e-1), (
        "max abs err = %f" % float(jnp.max(jnp.abs(f0_output - ref))))
    print("KERNEL_OK")
</pallas_src>

<mosaic_0001>
module attributes {stable_mosaic.version = 11 : i64} {
  func.func @_f0_predictor_kernel(%arg0: i32, %arg1: i32, %arg2: memref<1x1x128xf32, #tpu.memory_space<vmem>>, %arg3: memref<1x1x128xf32, #tpu.memory_space<vmem>>, %arg4: memref<1x32x1xf32, #tpu.memory_space<vmem>>, %arg5: memref<32x4xf32, #tpu.memory_space<vmem>>, %arg6: memref<1x1x128xf32, #tpu.memory_space<vmem>>) attributes {dimension_semantics = [#tpu.dimension_semantics<parallel>, #tpu.dimension_semantics<parallel>], iteration_bounds = array<i64: 2, 1>, scalar_prefetch = 0 : i64, scratch_operands = 0 : i64, tpu.core_type = #tpu.core_type<tc>, window_params = [{transform_indices = @transform_0, window_bounds = array<i64: 1, 1, 128>}, {transform_indices = @transform_1, window_bounds = array<i64: 1, 1, 128>}, {transform_indices = @transform_2, window_bounds = array<i64: 1, 32, 1>}, {pipeline_mode = #tpu.pipeline_mode<synchronous>, transform_indices = @transform_3, window_bounds = array<i64: 32, 4>}, {transform_indices = @transform_4, window_bounds = array<i64: 1, 1, 128>}]} {
    %c0 = arith.constant 0 : index
    %c0_0 = arith.constant 0 : index
    %c0_1 = arith.constant 0 : index
    %0 = vector.load %arg2[%c0, %c0_0, %c0_1] : memref<1x1x128xf32, #tpu.memory_space<vmem>>, vector<1x1x128xf32>
    %1 = vector.shape_cast %0 : vector<1x1x128xf32> to vector<1x128xf32>
    %c0_2 = arith.constant 0 : index
    %c0_3 = arith.constant 0 : index
    %c0_4 = arith.constant 0 : index
    %2 = vector.load %arg3[%c0_2, %c0_3, %c0_4] : memref<1x1x128xf32, #tpu.memory_space<vmem>>, vector<1x1x128xf32>
    %3 = vector.shape_cast %2 : vector<1x1x128xf32> to vector<1x128xf32>
    %c0_5 = arith.constant 0 : index
    %c0_6 = arith.constant 0 : index
    %c0_7 = arith.constant 0 : index
    %4 = vector.load %arg4[%c0_5, %c0_6, %c0_7] : memref<1x32x1xf32, #tpu.memory_space<vmem>>, vector<1x32x1xf32>
    %5 = vector.shape_cast %4 : vector<1x32x1xf32> to vector<32x1xf32>
    %c0_8 = arith.constant 0 : index
    %c0_9 = arith.constant 0 : index
    %6 = vector.load %arg5[%c0_8, %c0_9] : memref<32x4xf32, #tpu.memory_space<vmem>>, vector<32x1xf32>
    %c0_10 = arith.constant 0 : index
    %c1 = arith.constant 1 : index
    %7 = vector.load %arg5[%c0_10, %c1] : memref<32x4xf32, #tpu.memory_space<vmem>>, vector<32x1xf32>
    %c0_11 = arith.constant 0 : index
    %c2 = arith.constant 2 : index
    %8 = vector.load %arg5[%c0_11, %c2] : memref<32x4xf32, #tpu.memory_space<vmem>>, vector<32x1xf32>
    %c0_12 = arith.constant 0 : index
    %c3 = arith.constant 3 : index
    %9 = vector.load %arg5[%c0_12, %c3] : memref<32x4xf32, #tpu.memory_space<vmem>>, vector<1x1xf32>
    %10 = vector.broadcast %6 : vector<32x1xf32> to vector<32x128xf32>
    %11 = vector.broadcast %1 : vector<1x128xf32> to vector<32x128xf32>
    %12 = arith.mulf %10, %11 : vector<32x128xf32>
    %13 = vector.broadcast %7 : vector<32x1xf32> to vector<32x128xf32>
    %14 = vector.broadcast %3 : vector<1x128xf32> to vector<32x128xf32>
    %15 = arith.mulf %13, %14 : vector<32x128xf32>
    %16 = arith.addf %12, %15 : vector<32x128xf32>
    %17 = vector.broadcast %5 : vector<32x1xf32> to vector<32x128xf32>
    %18 = arith.addf %16, %17 : vector<32x128xf32>
    %cst = arith.constant 0.000000e+00 : f32
    %19 = vector.broadcast %cst : f32 to vector<32x128xf32>
    %20 = arith.maximumf %18, %19 : vector<32x128xf32>
    %21 = vector.broadcast %8 : vector<32x1xf32> to vector<32x128xf32>
    %22 = arith.mulf %20, %21 : vector<32x128xf32>
    %cst_13 = arith.constant dense<0.000000e+00> : vector<128xf32>
    %23 = vector.multi_reduction <add>, %22, %cst_13 [0] : vector<32x128xf32> to vector<128xf32>
    %24 = vector.shape_cast %23 : vector<128xf32> to vector<1x128xf32>
    %25 = vector.broadcast %9 : vector<1x1xf32> to vector<1x128xf32>
    %26 = arith.addf %24, %25 : vector<1x128xf32>
    %27 = vector.shape_cast %26 : vector<1x128xf32> to vector<1x1x128xf32>
    %c0_14 = arith.constant 0 : index
    %c0_15 = arith.constant 0 : index
    %c0_16 = arith.constant 0 : index
    %28 = vector.load %arg6[%c0_14, %c0_15, %c0_16] : memref<1x1x128xf32, #tpu.memory_space<vmem>>, vector<1x1x128xf32>
    tpu.vector_store %arg6[%c0_14, %c0_15, %c0_16], %27 {strides = array<i32>} : memref<1x1x128xf32, #tpu.memory_space<vmem>>, vector<1x1x128xf32>,
    return
  }
  func.func @transform_0(%arg0: i32, %arg1: i32) -> (i32, i32, i32) {
    %c0_i32 = arith.constant 0 : i32
    %c0_i32_0 = arith.constant 0 : i32
    return %arg0, %c0_i32, %arg1 : i32, i32, i32
  }
  func.func @transform_1(%arg0: i32, %arg1: i32) -> (i32, i32, i32) {
    %c0_i32 = arith.constant 0 : i32
    %c0_i32_0 = arith.constant 0 : i32
    return %arg0, %c0_i32, %arg1 : i32, i32, i32
  }
  func.func @transform_2(%arg0: i32, %arg1: i32) -> (i32, i32, i32) {
    %c0_i32 = arith.constant 0 : i32
    %c0_i32_0 = arith.constant 0 : i32
    %c0_i32_1 = arith.constant 0 : i32
    return %arg0, %c0_i32, %c0_i32_0 : i32, i32, i32
  }
  func.func @transform_3(%arg0: i32, %arg1: i32) -> (i32, i32) {
    %c0_i32 = arith.constant 0 : i32
    %c0_i32_0 = arith.constant 0 : i32
    %c0_i32_1 = arith.constant 0 : i32
    return %c0_i32, %c0_i32_0 : i32, i32
  }
  func.func @transform_4(%arg0: i32, %arg1: i32) -> (i32, i32, i32) {
    %c0_i32 = arith.constant 0 : i32
    %c0_i32_0 = arith.constant 0 : i32
    return %arg0, %c0_i32, %arg1 : i32, i32, i32
  }
}

</mosaic_0001>

<bundles_post_ra>
// kernel: _run_f0_kernel.1
= control target key start
LH: loop header
LB: loop body
LE: loop exit
PB: predicated region body
PF: predicated region fallthrough
CT: control target
= control target key end

     0   :  { %9 = vsyncpa [#allocation3], 0  ;;  %s823_s0 = inlined_call_operand.vmem [shape: f32[2,1,16], index: 0, kind: input, shape index: {}]   ;;  %s824_s1 = inlined_call_operand.vmem [shape: f32[2,1,16], index: 1, kind: input, shape index: {}]   ;;  %s825_s2 = inlined_call_operand.vmem [shape: f32[2,32,1], index: 2, kind: input, shape index: {}]   ;;  %s826_s3 = inlined_call_operand.vmem [shape: f32[32,4], index: 3, kind: input, shape index: {}]   ;;  %s827_s4 = inlined_call_operand.hbm [shape: f32[2,1,16], index: 4, kind: output, shape index: {}]  }
   0x1   :  { %11 = vsyncpa [#allocation3 + $0x1], 0  ;;  %s685_s15 = smov 0   ;;  %s687_s16 = smov 0  }
   0x2   :  { %s689_s17 = smov 0   ;;  %s691_s18 = smov 0  }
   0x3   :  { %s693_s19 = smov 0   ;;  %s695_s20 = smov 0  }
   0x4 LB: > { %s496_s21 = sadd.s32 4294967295, %s653_s20   ;;  %s497_s22 = sadd.s32 4294967294, %s653_s20   ;;  %s653_s20 = sphi %s695_s20, %s17_s20   ;;  %s649_s19 = sphi %s693_s19, %s834_s19   ;;  %s645_s18 = sphi %s691_s18, %s833_s18   ;;  %s641_s17 = sphi %s689_s17, %s832_s17   ;;  %s637_s16 = sphi %s687_s16, %s831_s16   ;;  %s633_s15 = sphi %s685_s15, %s830_s15  }
   0x5   : > { %s29_s23 = sadd.s32 1, %s649_s19  ;;  %s141_s24 = sadd.s32 1, %s641_s17 }
   0x6   : > { %p31_p0 = scmp.ge.s32.totalorder %s29_s23, 2  ;;  %p151_p1 = scmp.ne.s32.totalorder %s641_s17, %s637_s16 }
   0x7   : > { %p152_p2 = scmp.eq.s32.totalorder %s496_s21, 1  ;;  %p157_p3 = scmp.ne.s32.totalorder %s637_s16, %s633_s15 }
   0x8   : > { %s836_s23 = smov (%p31_p0, %s29_s23), 0  ;;  %p158_p5 = scmp.eq.s32.totalorder %s497_s22, 1 }
   0x9   : > { %p725_p4 = por %p152_p2, %p151_p1  ;;  %s136_s26 = ssub.s32 %s649_s19, %s836_s23 }
   0xa   : > { %p500_p6 = scmp.ge.s32.totalorder %s653_s20, 1  ;;  %p139_p7 = scmp.eq.s32.totalorder %s136_s26, 0 }
   0xb   : > { %p732_p8 = por %p158_p5, %p157_p3  ;;  %p205_p9 = scmp.lt.s32.totalorder %s653_s20, 3 }
   0xc   : > { %s738_s28 = scalar_select %p139_p7, %s641_s17, %s141_s24  }
   0xd   : > { %p206_p10 = pnand %p500_p6, %p205_p9 }
   0xe   : > { %v265_v0 = vld [vmem:[%s826_s3] sm:$0xff] (!%p206_p10)  ;;  %v655_v1 = vmov (!%p206_p10), 1   ;;  %v656_v2 = vmov (!%p206_p10), 0   ;;  %p242_p11 = scmp.lt.s32.totalorder (!%p206_p10), %s645_s18, 1  ;;  %v266_v3 = vld [vmem:[%s826_s3 + $0x8] sm:$0xff] (!%p206_p10)  ;;  %v267_v4 = vld [vmem:[%s826_s3 + $0x10] sm:$0xff] (!%p206_p10) }
   0xf   : > { %209 = sbr.rel (%p206_p10) target bundleno = 208 (0xd0), region = 36  ;;  %569 = vset.pattern.permute.xlu1 (!%p206_p10), %v655_v1  ;;  %568 = vset.pattern.permute.xlu0 (!%p206_p10), %v656_v2  ;;  %v268_v5 = vld [vmem:[%s826_s3 + $0x18] sm:$0xff] (!%p206_p10)  ;;  %v657_v10 = vmov (!%p206_p10), 2   ;;  %v269_v11 = vld [vmem:[%s826_s3] sm:$0x1] (!%p206_p10)  ;;  %v658_v12 = vmov (!%p206_p10), 3  }
  0x10   : > { %301 = vperm.xlu1 (!%p206_p10), %569, %v265_v0   ;;  %272 = vperm.xlu0 (!%p206_p10), %568, %v265_v0   ;;  %s505_s9 = sshll.u32 (!%p206_p10), %s645_s18, 4 }
  0x11   : > { %s776_s14 = scalar_lea.hbm (!%p206_p10), %s827_s4, %s505_s9 }
  0x14   : > { %305 = vperm.xlu1 (!%p206_p10), %569, %v266_v3   ;;  %277 = vperm.xlu0 (!%p206_p10), %568, %v266_v3  }
  0x16   : > { %s748_s7 = scalar_select %p242_p11, %s645_s18, 1 }
  0x17   : > { %s659_s18 = smov [#allocation2]  }
  0x18   : > { %s508_s10 = sshll.u32 %s748_s7, 5  ;;  %309 = vperm.xlu1 %569, %v267_v4   ;;  %282 = vperm.xlu0 %568, %v267_v4   ;;  %s253_s30 = scalar_lea.vmem %s824_s1, %s748_s7 }
  0x19   : > { %s258_s21 = scalar_lea.vmem %s825_s2, %s508_s10  ;;  %s247_s8 = scalar_lea.vmem %s823_s0, %s748_s7  ;;  %v504_v19 = vld [vmem:[%s253_s30] ss:$0 sm:$0xff] }
  0x1a   : > { %v261_v6 = vld [vmem:[%s258_s21] sm:$0xff]  ;;  %v262_v7 = vld [vmem:[%s258_s21 + $0x8] sm:$0xff]  ;;  %v263_v8 = vld [vmem:[%s258_s21 + $0x10] sm:$0xff]  ;;  %s240_s7 = sand.u32 1, %s637_s16   ;;  %s579_s24 = sshll.u32 %s659_s18, 4  ;;  %s580_s24 = int_to_ptr.vmem [resolvable:$false] %s579_s24 }
  0x1b   : > { %v264_v9 = vld [vmem:[%s258_s21 + $0x18] sm:$0xff]  ;;  %v503_v20 = vld [vmem:[%s247_s8] ss:$0 sm:$0xff]  ;;  %s241_s10 = scalar_lea.vmem [#allocation2], %s240_s7  ;;  %s395_s21 = scalar_lea.sflag [#allocation3], %s240_s7 }
  0x1c   : > { %313 = vperm.xlu1 %569, %v268_v5   ;;  %287 = vperm.xlu0 %568, %v268_v5   ;;  %s408_s11 = sshll.u32 %s241_s10, 4  ;;  %s581_s26 = scalar_lea.vmem %s580_s24, 32  ;;  %s778_s11 = int_to_ptr.vmem [resolvable:$true] %s408_s11 }
  0x1d   : > { %s575_s22 = scalar_lea.vmem %s778_s11, 16  ;;  %p582_p1 = scmp.lt.s32.totalorder %s778_s11, %s580_s24 }
  0x1e   : > { %p576_p12 = scmp.ne.s32.totalorder %s778_s11, %s575_s22  ;;  %p583_p2 = scmp.lt.s32.totalorder %s581_s26, %s575_s22 }
  0x20   : > { %570 = vset.pattern.permute.xlu1 %v656_v2  ;;  %332 = vperm.xlu0 %568, %v261_v6   ;;  %p577_p13 = pnand %p576_p12, %p725_p4  ;;  %p584_p3 = por %p583_p2, %p582_p1 }
  0x21   : > { %337 = vperm.xlu1 %570, %v262_v7  }
  0x22   : > { %p578_p0 = pneg %p577_p13 }
  0x24   : > { %342 = vperm.xlu0 %568, %v263_v8   ;;  %p585_p5 = pnand %p584_p3, %p578_p0 }
  0x25   : > { %347 = vperm.xlu1 %570, %v264_v9  }
  0x28   : > { %571 = vset.pattern.permute.xlu0 %v657_v10 }
  0x29   : > { %572 = vset.pattern.permute.xlu1 %v657_v10  ;;  %359 = vperm.xlu0 %571, %v265_v0  }
  0x2a   : > { %363 = vperm.xlu1 %572, %v266_v3  }
  0x2d   : > { %371 = vperm.xlu0 %571, %v268_v5  }
  0x2e   : > { %367 = vperm.xlu1 %572, %v267_v4  }
  0x31   : > { %574 = vset.pattern.permute.xlu0 %v658_v12 }
  0x32   : > { %573 = vset.pattern.permute.xlu1 %v658_v12 }
  0x33   : > { %389 = vperm.xlu1 %573, %v269_v11  }
  0x8f   : > { %v302_v13 = vpop.permute.xlu1 %301  ;;  %v273_v14 = vpop.permute.xlu0 %272 }
  0x90   : > { %v322_v23 = vmul.f32 %v504_v19, %v302_v13  ;;  %v296_v24 = vmul.f32 %v503_v20, %v273_v14 }
  0x92   : > { %v326_v31 = vadd.f32 %v322_v23, %v296_v24 }
  0x93   : > { %v306_v15 = vpop.permute.xlu1 %305  ;;  %v278_v16 = vpop.permute.xlu0 %277 }
  0x94   : > { %v323_v25 = vmul.f32 %v504_v19, %v306_v15  ;;  %v297_v26 = vmul.f32 %v503_v20, %v278_v16 }
  0x96   : > { %v327_v32 = vadd.f32 %v323_v25, %v297_v26 }
  0x97   : > { %v310_v17 = vpop.permute.xlu1 %309  ;;  %v283_v18 = vpop.permute.xlu0 %282 }
  0x98   : > { %v324_v29 = vmul.f32 %v504_v19, %v310_v17  ;;  %v298_v30 = vmul.f32 %v503_v20, %v283_v18 }
  0x9a   : > { %v328_v39 = vadd.f32 %v324_v29, %v298_v30 }
  0x9b   : > { %v314_v21 = vpop.permute.xlu1 %313  ;;  %v288_v22 = vpop.permute.xlu0 %287 }
  0x9c   : > { %v325_v34 = vmul.f32 %v504_v19, %v314_v21  ;;  %v299_v35 = vmul.f32 %v503_v20, %v288_v22 }
  0x9e   : > { %v329_v43 = vadd.f32 %v325_v34, %v299_v35 }
  0x9f   : > { %v333_v27 = vpop.permute.xlu0 %332 }
  0xa0   : > { %v338_v28 = vpop.permute.xlu1 %337  ;;  %v350_v36 = vadd.f32 %v333_v27, %v326_v31 }
  0xa1   : > { %v351_v37 = vadd.f32 %v338_v28, %v327_v32 }
  0xa2   : > { %v354_v40 = vmax.f32 %v350_v36, 0.0 }
  0xa3   : > { %v343_v33 = vpop.permute.xlu0 %342  ;;  %v355_v41 = vmax.f32 %v351_v37, 0.0 }
  0xa4   : > { %v348_v38 = vpop.permute.xlu1 %347  ;;  %v352_v42 = vadd.f32 %v343_v33, %v328_v39 }
  0xa5   : > { %v353_v46 = vadd.f32 %v348_v38, %v329_v43 }
  0xa6   : > { %v356_v49 = vmax.f32 %v352_v42, 0.0 }
  0xa7   : > { %v357_v52 = vmax.f32 %v353_v46, 0.0 }
  0xa8   : > { %v360_v44 = vpop.permute.xlu0 %359 }
  0xa9   : > { %v364_v45 = vpop.permute.xlu1 %363  ;;  %v374_v47 = vmul.f32 %v360_v44, %v354_v40 }
  0xaa   : > { %v375_v48 = vmul.f32 %v364_v45, %v355_v41 }
  0xac   : > { %v372_v50 = vpop.permute.xlu0 %371  ;;  %v378_v53 = vadd.f32 %v375_v48, %v374_v47 }
  0xad   : > { %v368_v51 = vpop.permute.xlu1 %367  ;;  %v377_v55 = vmul.f32 %v372_v50, %v357_v52 }
  0xae   : > { %v376_v54 = vmul.f32 %v368_v51, %v356_v49 }
  0xb0   : > { %v379_v56 = vadd.f32 %v378_v53, %v376_v54 }
  0xb2   : > { %v380_v57 = vadd.f32 %v379_v56, %v377_v55  ;;  %v390_v63 = vpop.permute.xlu1 %389 }
  0xb4   : > { %v381_v58 = vrot.slane %v380_v57, 4 }
  0xb6   : > { %v382_v59 = vadd.f32 %v381_v58, %v380_v57 }
  0xb8   : > { %v383_v60 = vrot.slane %v382_v59, 2 }
  0xba   : > { %v384_v61 = vadd.f32 %v383_v60, %v382_v59 }
  0xbc   : > { %v385_v62 = vrot.slane %v384_v61, 1 }
  0xbe   : > { %v386_v0 = vadd.f32 %v385_v62, %v384_v61 }
  0xc0   : > { %v392_v1 = vadd.f32 %v390_v63, %v386_v0 }
  0xc2   : > { %393 = vst [vmem:[%s241_s10] sm:$0x1] %v392_v1 }
  0xc3   : > { %588 = shalt.err (!%p585_p5)
}
  0xc4   : > { %s589_s29 = scalar_lea.hbm %s776_s14, 16  ;;  %s593_s6 = scalar_lea.hbm %s827_s4, 32 }
  0xc5   : > { %p590_p6 = scmp.ne.s32.totalorder %s776_s14, %s589_s29  ;;  %p594_p10 = scmp.lt.u32.totalorder %s776_s14, %s827_s4 }
  0xc6   : > { %p595_p11 = scmp.lt.u32.totalorder %s593_s6, %s589_s29  ;;  %p597_p13 = scmp.lt.u32.totalorder %s589_s29, %s776_s14 }
  0xc7   : > { %p591_p7 = pnand %p590_p6, %p725_p4 }
  0xc8   : > { %p596_p12 = por %p595_p11, %p594_p10 }
  0xc9   : > { %p592_p9 = pneg %p591_p7 }
  0xca   : > { %p598_p0 = por %p597_p13, %p596_p12 }
  0xcc   : > { %p599_p1 = pnand %p598_p0, %p592_p9 }
  0xce   : > { %602 = shalt.err (!%p599_p1)
}
  0xcf   : > { %509 = dma.vmem_to_hbm [thread:$0]  (%p725_p4), %s778_s11, 16, %s776_s14, %s395_s21  }
  0xd0 PF: > { %p515_p2 = scmp.ge.s32.totalorder %s653_s20, 2  ;;  %s420_s9 = sand.u32 1, %s633_s15  }
  0xd1   : > { %s421_s10 = scalar_lea.sflag [#allocation3], %s420_s9 }
  0xd2   : > { %p512_p3 = pnand %p515_p2, %p732_p8 }
  0xd4   : > { %628 = dma.done.wait (!%p512_p3), %s421_s10, 16  }
  0xd5   : > { %630 = vsyncadd (!%p512_p3), %s421_s10, 4294967280  ;;  %s17_s20 = sadd.s32 1, %s653_s20   ;;  %s830_s15 = smov %s637_s16 }
  0xd6   : > { %p14_p5 = scmp.ge.s32.totalorder %s17_s20, 4   ;;  %s831_s16 = smov %s641_s17 }
  0xd7   : > { %s832_s17 = smov %s738_s28  ;;  %s833_s18 = smov %s649_s19 }
  0xd8   : > { %s834_s19 = smov %s836_s23  ;;  %16 = sbr.rel (!%p14_p5) target bundleno = 4 (0x4), region = 77 }
  0xdf   :  { %425 = vsyncpa [#allocation3], 1 }
  0xe0   :  { %427 = vsyncpa [#allocation3 + $0x1], 1 }

</bundles_post_ra>
